<compile_context>
chip_gen: v6e
topology: v6e:2x2x1
jax: 0.10.0
libtpu: 0.0.40
codegen_flags: <defaults>
</compile_context>

<pallas_src>
import functools
import math

import jax
import jax.numpy as jnp
import numpy as np
from jax.experimental import pallas as pl
from jax.experimental.pallas import tpu as pltpu


# ---------------------------------------------------------------------------
# Kernel A: per-head QKV projection + rotary embedding (+ attn_scale folding)
# ---------------------------------------------------------------------------
def _qkv_rope_kernel(x_ref, wq_ref, wk_ref, wv_ref, cos_ref, sin_ref, rot_ref,
                     q_ref, k_ref, v_ref, *, attn_scale):
    x = x_ref[0].astype(jnp.bfloat16)            # (Ts, D)
    wq = wq_ref[0].astype(jnp.bfloat16)          # (D, hd)   this head's slice
    wk = wk_ref[0].astype(jnp.bfloat16)
    wv = wv_ref[0].astype(jnp.bfloat16)
    rot = rot_ref[...].astype(jnp.bfloat16)      # (hd, hd)  signed pair-swap
    cos = cos_ref[...]                           # (Ts, hd)  f32, pair-expanded
    sin = sin_ref[...]

    # Projections: bf16 operands, f32 accumulation on the MXU.
    q = jnp.dot(x, wq, preferred_element_type=jnp.float32)     # (Ts, hd) f32
    k = jnp.dot(x, wk, preferred_element_type=jnp.float32)
    v = jnp.dot(x, wv, preferred_element_type=jnp.float32)

    # Interleaved RoPE:  out = t * cosE + (t @ P) * sinE  with
    #   (t @ P)[:, 2j] = -t[:, 2j+1]   and   (t @ P)[:, 2j+1] = t[:, 2j].
    # P is a tiny signed permutation -> one extra small MXU matmul instead of
    # lane rolls + selects (and no negative-shift roll, which is invalid).
    q_sw = jnp.dot(q.astype(jnp.bfloat16), rot,
                   preferred_element_type=jnp.float32)
    k_sw = jnp.dot(k.astype(jnp.bfloat16), rot,
                   preferred_element_type=jnp.float32)
    q = (q * cos + q_sw * sin) * attn_scale      # fold 1/sqrt(hd) into q once
    k = k * cos + k_sw * sin

    q_ref[0, 0] = q.astype(q_ref.dtype)
    k_ref[0, 0] = k.astype(k_ref.dtype)
    v_ref[0, 0] = v.astype(v_ref.dtype)


# ---------------------------------------------------------------------------
# Kernel B: attention (causal) + per-head output projection, accumulated over
# the head grid axis into a lane-dense (block_q, dim) output slab.
# ---------------------------------------------------------------------------
def _attention_kernel(q_ref, k_ref, v_ref, wo_ref, o_ref, acc_ref, *, block_q):
    qt = pl.program_id(1)
    h = pl.program_id(2)

    @pl.when(h == 0)
    def _():
        acc_ref[...] = jnp.zeros_like(acc_ref)

    q = q_ref[0, 0]                              # (Tq, hd) bf16, pre-scaled
    k = k_ref[0, 0]                              # (S,  hd) bf16
    v = v_ref[0, 0]                              # (S,  hd) bf16

    # scores = q @ k.T without materializing the transpose.
    s = jax.lax.dot_general(q, k, (((1,), (1,)), ((), ())),
                            preferred_element_type=jnp.float32)  # (Tq, S) f32

    # Causal mask generated in-kernel (no (S, S) mask DMA).
    tq, skv = s.shape
    row = jax.lax.broadcasted_iota(jnp.int32, (tq, skv), 0) + qt * block_q
    col = jax.lax.broadcasted_iota(jnp.int32, (tq, skv), 1)
    s = jnp.where(col <= row, s, -1e30)

    # Softmax in f32.  (On hardware, pl.reciprocal(l, approx=True) would move
    # the divide to the EUP slot; a plain divide is kept for portability.)
    m = jnp.max(s, axis=-1, keepdims=True)
    e = jnp.exp(s - m)
    l = jnp.sum(e, axis=-1, keepdims=True)
    p = (e * (1.0 / l)).astype(jnp.bfloat16)

    ctx = jnp.dot(p, v, preferred_element_type=jnp.float32)      # (Tq, hd) f32
    wo = wo_ref[0].astype(jnp.bfloat16)                          # (hd, D)
    acc_ref[...] += jnp.dot(ctx.astype(jnp.bfloat16), wo,
                            preferred_element_type=jnp.float32)  # (Tq, D)

    @pl.when(h == pl.num_programs(2) - 1)
    def _():
        o_ref[0] = acc_ref[...].astype(o_ref.dtype)


def _rope_pair_swap_matrix(head_dim):
    """P with (t @ P)[:, 2j] = -t[:, 2j+1] and (t @ P)[:, 2j+1] = t[:, 2j]."""
    p = np.zeros((head_dim, head_dim), dtype=np.float32)
    even = np.arange(0, head_dim, 2)
    p[even + 1, even] = -1.0
    p[even, even + 1] = 1.0
    return jnp.asarray(p)


def self_attention_pallas(x, wq, wk, wv, wo, cos_half, sin_half, *,
                          n_heads, head_dim, attn_scale,
                          block_q=128, block_s=128):
    """Pallas forward for SelfAttention (start_pos=0, causal mask, no dropout).

    wq/wk/wv are [dim, n_heads*head_dim] and wo is [n_heads*head_dim, dim]
    (transposed relative to nn.Linear.weight).  cos_half/sin_half are the
    rotary tables of shape [seq, head_dim // 2].
    """
    B, S, D = x.shape
    H, hd = n_heads, head_dim
    assert hd % 2 == 0, "head_dim must be even for rotary embeddings"
    assert wq.shape == (D, H * hd) and wo.shape == (H * hd, D)

    block_q = min(block_q, S)
    block_s = min(block_s, S)
    assert S % block_q == 0 and (block_q % 8 == 0 or block_q == S)
    assert S % block_s == 0 and (block_s % 8 == 0 or block_s == S)

    # Head-major weight layouts (done once; a real model would store them so).
    wq3 = wq.reshape(D, H, hd).transpose(1, 0, 2)    # (H, D, hd)
    wk3 = wk.reshape(D, H, hd).transpose(1, 0, 2)
    wv3 = wv.reshape(D, H, hd).transpose(1, 0, 2)
    wo3 = wo.reshape(H, hd, D)                       # (H, hd, D)

    # Pair-expanded RoPE tables, (S, hd) -- NOT tiled across heads.
    cos_e = jnp.repeat(cos_half.astype(jnp.float32), 2, axis=-1)
    sin_e = jnp.repeat(sin_half.astype(jnp.float32), 2, axis=-1)
    rot = _rope_pair_swap_matrix(hd)

    qkv_shape = jax.ShapeDtypeStruct((B, H, S, hd), jnp.bfloat16)
    qkv_kernel = functools.partial(_qkv_rope_kernel, attn_scale=attn_scale)

    q, k, v = pl.pallas_call(
        qkv_kernel,
        out_shape=(qkv_shape, qkv_shape, qkv_shape),
        grid_spec=pltpu.PrefetchScalarGridSpec(
            num_scalar_prefetch=0,
            grid=(B, S // block_s, H),
            in_specs=[
                pl.BlockSpec((1, block_s, D), lambda b, st, h: (b, st, 0)),  # x
                pl.BlockSpec((1, D, hd), lambda b, st, h: (h, 0, 0)),        # wq
                pl.BlockSpec((1, D, hd), lambda b, st, h: (h, 0, 0)),        # wk
                pl.BlockSpec((1, D, hd), lambda b, st, h: (h, 0, 0)),        # wv
                pl.BlockSpec((block_s, hd), lambda b, st, h: (st, 0)),       # cos
                pl.BlockSpec((block_s, hd), lambda b, st, h: (st, 0)),       # sin
                pl.BlockSpec((hd, hd), lambda b, st, h: (0, 0)),             # rot
            ],
            out_specs=(
                pl.BlockSpec((1, 1, block_s, hd), lambda b, st, h: (b, h, st, 0)),
                pl.BlockSpec((1, 1, block_s, hd), lambda b, st, h: (b, h, st, 0)),
                pl.BlockSpec((1, 1, block_s, hd), lambda b, st, h: (b, h, st, 0)),
            ),
        ),
        compiler_params=pltpu.CompilerParams(
            dimension_semantics=("parallel", "parallel", "parallel"),
            vmem_limit_bytes=64 * 1024 * 1024),
    )(x, wq3, wk3, wv3, cos_e, sin_e, rot)

    attn_kernel = functools.partial(_attention_kernel, block_q=block_q)
    out = pl.pallas_call(
        attn_kernel,
        out_shape=jax.ShapeDtypeStruct((B, S, D), x.dtype),
        grid_spec=pltpu.PrefetchScalarGridSpec(
            num_scalar_prefetch=0,
            grid=(B, S // block_q, H),
            in_specs=[
                pl.BlockSpec((1, 1, block_q, hd), lambda b, qt, h: (b, h, qt, 0)),  # q
                pl.BlockSpec((1, 1, S, hd), lambda b, qt, h: (b, h, 0, 0)),         # k
                pl.BlockSpec((1, 1, S, hd), lambda b, qt, h: (b, h, 0, 0)),         # v
                pl.BlockSpec((1, hd, D), lambda b, qt, h: (h, 0, 0)),               # wo
            ],
            out_specs=pl.BlockSpec((1, block_q, D), lambda b, qt, h: (b, qt, 0)),
            scratch_shapes=[pltpu.VMEM((block_q, D), jnp.float32)],
        ),
        compiler_params=pltpu.CompilerParams(
            dimension_semantics=("parallel", "parallel", "arbitrary"),
            vmem_limit_bytes=64 * 1024 * 1024),
    )(q, k, v, wo3)
    return out


def self_attention_reference(x, wq, wk, wv, wo, cos_half, sin_half, *,
                             n_heads, head_dim, attn_scale):
    """Pure-JAX replica of the PyTorch forward (start_pos=0, causal, no dropout)."""
    B, S, D = x.shape
    q = (x @ wq).reshape(B, S, n_heads, head_dim)
    k = (x @ wk).reshape(B, S, n_heads, head_dim)
    v = (x @ wv).reshape(B, S, n_heads, head_dim)

    def rope(t):
        tr = t[..., 0::2]
        ti = t[..., 1::2]
        c = cos_half[None, :, None, :]
        s = sin_half[None, :, None, :]
        outr = tr * c - ti * s
        outi = tr * s + ti * c
        return jnp.stack([outr, outi], axis=-1).reshape(t.shape)

    q = rope(q)
    k = rope(k)
    scores = jnp.einsum('bshd,bthd->bhst', q, k) * attn_scale
    causal = jnp.tril(jnp.ones((S, S), dtype=bool))
    mask = jnp.where(causal, 0.0, -1e9).astype(jnp.float32)
    scores = scores + mask[None, None, :, :]
    p = jax.nn.softmax(scores.astype(jnp.float32), axis=-1)
    out = jnp.einsum('bhst,bthd->bshd', p, v).reshape(B, S, n_heads * head_dim)
    return out @ wo


if __name__ == "__main__":
    # Small config consistent with ModelArgs semantics (even head_dim).
    batch, seq_len, dim = 2, 16, 32
    n_heads, head_dim = 4, 8
    rope_theta = 10000.0
    attn_scale = 1.0 / math.sqrt(head_dim)
    HHD = n_heads * head_dim

    key = jax.random.PRNGKey(0)
    kx, kq, kk, kv, ko = jax.random.split(key, 5)
    x = jax.random.normal(kx, (batch, seq_len, dim), dtype=jnp.float32)
    # nn.Linear(dim, out) weight is [out, dim]; we keep the transposed [dim, out].
    wq = jax.random.normal(kq, (dim, HHD), dtype=jnp.float32) * 0.05
    wk = jax.random.normal(kk, (dim, HHD), dtype=jnp.float32) * 0.05
    wv = jax.random.normal(kv, (dim, HHD), dtype=jnp.float32) * 0.05
    wo = jax.random.normal(ko, (HHD, dim), dtype=jnp.float32) * 0.05

    # Rotary frequency tables (equivalent to precomputed complex freqs_cis).
    inv_freq = 1.0 / (rope_theta ** (jnp.arange(0, head_dim, 2,
                                                dtype=jnp.float32) / head_dim))
    angles = jnp.arange(seq_len, dtype=jnp.float32)[:, None] * inv_freq[None, :]
    cos_half = jnp.cos(angles)                     # (S, head_dim // 2)
    sin_half = jnp.sin(angles)

    out = self_attention_pallas(x, wq, wk, wv, wo, cos_half, sin_half,
                                n_heads=n_heads, head_dim=head_dim,
                                attn_scale=attn_scale,
                                block_q=8, block_s=8)   # 2 q-tiles at S=16
    out = jax.block_until_ready(out)

    ref = self_attention_reference(x, wq, wk, wv, wo, cos_half, sin_half,
                                   n_heads=n_heads, head_dim=head_dim,
                                   attn_scale=attn_scale)
    ref = jax.block_until_ready(ref)

    # bf16 matmul operands inside the kernel -> compare with loose tolerance.
    np.testing.assert_allclose(np.asarray(out), np.asarray(ref),
                               rtol=2e-2, atol=2e-2)
    print("KERNEL_OK")
</pallas_src>

<mosaic_0001>
module attributes {stable_mosaic.version = 11 : i64} {
  func.func @_qkv_rope_kernel(%arg0: i32, %arg1: i32, %arg2: i32, %arg3: memref<1x8x32xf32, #tpu.memory_space<vmem>>, %arg4: memref<1x32x8xf32, #tpu.memory_space<vmem>>, %arg5: memref<1x32x8xf32, #tpu.memory_space<vmem>>, %arg6: memref<1x32x8xf32, #tpu.memory_space<vmem>>, %arg7: memref<8x8xf32, #tpu.memory_space<vmem>>, %arg8: memref<8x8xf32, #tpu.memory_space<vmem>>, %arg9: memref<8x8xf32, #tpu.memory_space<vmem>>, %arg10: memref<1x1x8x8xbf16, #tpu.memory_space<vmem>>, %arg11: memref<1x1x8x8xbf16, #tpu.memory_space<vmem>>, %arg12: memref<1x1x8x8xbf16, #tpu.memory_space<vmem>>) attributes {dimension_semantics = [#tpu.dimension_semantics<parallel>, #tpu.dimension_semantics<parallel>, #tpu.dimension_semantics<parallel>], iteration_bounds = array<i64: 2, 2, 4>, scalar_prefetch = 0 : i64, scratch_operands = 0 : i64, tpu.core_type = #tpu.core_type<tc>, window_params = [{transform_indices = @transform_0, window_bounds = array<i64: 1, 8, 32>}, {transform_indices = @transform_1, window_bounds = array<i64: 1, 32, 8>}, {transform_indices = @transform_2, window_bounds = array<i64: 1, 32, 8>}, {transform_indices = @transform_3, window_bounds = array<i64: 1, 32, 8>}, {transform_indices = @transform_4, window_bounds = array<i64: 8, 8>}, {transform_indices = @transform_5, window_bounds = array<i64: 8, 8>}, {pipeline_mode = #tpu.pipeline_mode<synchronous>, transform_indices = @transform_6, window_bounds = array<i64: 8, 8>}, {transform_indices = @transform_7, window_bounds = array<i64: 1, 1, 8, 8>}, {transform_indices = @transform_8, window_bounds = array<i64: 1, 1, 8, 8>}, {transform_indices = @transform_9, window_bounds = array<i64: 1, 1, 8, 8>}]} {
    %c0 = arith.constant 0 : index
    %c0_0 = arith.constant 0 : index
    %c0_1 = arith.constant 0 : index
    %0 = vector.load %arg3[%c0, %c0_0, %c0_1] : memref<1x8x32xf32, #tpu.memory_space<vmem>>, vector<1x8x32xf32>
    %1 = vector.shape_cast %0 : vector<1x8x32xf32> to vector<8x32xf32>
    %2 = arith.truncf %1 : vector<8x32xf32> to vector<8x32xbf16>
    %c0_2 = arith.constant 0 : index
    %c0_3 = arith.constant 0 : index
    %c0_4 = arith.constant 0 : index
    %3 = vector.load %arg4[%c0_2, %c0_3, %c0_4] : memref<1x32x8xf32, #tpu.memory_space<vmem>>, vector<1x32x8xf32>
    %4 = vector.shape_cast %3 : vector<1x32x8xf32> to vector<32x8xf32>
    %5 = arith.truncf %4 : vector<32x8xf32> to vector<32x8xbf16>
    %c0_5 = arith.constant 0 : index
    %c0_6 = arith.constant 0 : index
    %c0_7 = arith.constant 0 : index
    %6 = vector.load %arg5[%c0_5, %c0_6, %c0_7] : memref<1x32x8xf32, #tpu.memory_space<vmem>>, vector<1x32x8xf32>
    %7 = vector.shape_cast %6 : vector<1x32x8xf32> to vector<32x8xf32>
    %8 = arith.truncf %7 : vector<32x8xf32> to vector<32x8xbf16>
    %c0_8 = arith.constant 0 : index
    %c0_9 = arith.constant 0 : index
    %c0_10 = arith.constant 0 : index
    %9 = vector.load %arg6[%c0_8, %c0_9, %c0_10] : memref<1x32x8xf32, #tpu.memory_space<vmem>>, vector<1x32x8xf32>
    %10 = vector.shape_cast %9 : vector<1x32x8xf32> to vector<32x8xf32>
    %11 = arith.truncf %10 : vector<32x8xf32> to vector<32x8xbf16>
    %c0_11 = arith.constant 0 : index
    %c0_12 = arith.constant 0 : index
    %12 = vector.load %arg9[%c0_11, %c0_12] : memref<8x8xf32, #tpu.memory_space<vmem>>, vector<8x8xf32>
    %13 = arith.truncf %12 : vector<8x8xf32> to vector<8x8xbf16>
    %c0_13 = arith.constant 0 : index
    %c0_14 = arith.constant 0 : index
    %14 = vector.load %arg7[%c0_13, %c0_14] : memref<8x8xf32, #tpu.memory_space<vmem>>, vector<8x8xf32>
    %c0_15 = arith.constant 0 : index
    %c0_16 = arith.constant 0 : index
    %15 = vector.load %arg8[%c0_15, %c0_16] : memref<8x8xf32, #tpu.memory_space<vmem>>, vector<8x8xf32>
    %cst = arith.constant dense<0.000000e+00> : vector<8x8xf32>
    %16 = tpu.matmul %2, %5, %cst {dimension_numbers = #tpu.dot_dimension_numbers<[1], [0], [0], [1], [0, 0, 1, 1], [], []>} : vector<8x32xbf16>, vector<32x8xbf16>, vector<8x8xf32> -> vector<8x8xf32>
    %cst_17 = arith.constant dense<0.000000e+00> : vector<8x8xf32>
    %17 = tpu.matmul %2, %8, %cst_17 {dimension_numbers = #tpu.dot_dimension_numbers<[1], [0], [0], [1], [0, 0, 1, 1], [], []>} : vector<8x32xbf16>, vector<32x8xbf16>, vector<8x8xf32> -> vector<8x8xf32>
    %cst_18 = arith.constant dense<0.000000e+00> : vector<8x8xf32>
    %18 = tpu.matmul %2, %11, %cst_18 {dimension_numbers = #tpu.dot_dimension_numbers<[1], [0], [0], [1], [0, 0, 1, 1], [], []>} : vector<8x32xbf16>, vector<32x8xbf16>, vector<8x8xf32> -> vector<8x8xf32>
    %19 = arith.truncf %16 : vector<8x8xf32> to vector<8x8xbf16>
    %cst_19 = arith.constant dense<0.000000e+00> : vector<8x8xf32>
    %20 = tpu.matmul %19, %13, %cst_19 {dimension_numbers = #tpu.dot_dimension_numbers<[1], [0], [0], [1], [0, 0, 1, 1], [], []>} : vector<8x8xbf16>, vector<8x8xbf16>, vector<8x8xf32> -> vector<8x8xf32>
    %21 = arith.truncf %17 : vector<8x8xf32> to vector<8x8xbf16>
    %cst_20 = arith.constant dense<0.000000e+00> : vector<8x8xf32>
    %22 = tpu.matmul %21, %13, %cst_20 {dimension_numbers = #tpu.dot_dimension_numbers<[1], [0], [0], [1], [0, 0, 1, 1], [], []>} : vector<8x8xbf16>, vector<8x8xbf16>, vector<8x8xf32> -> vector<8x8xf32>
    %23 = arith.mulf %16, %14 : vector<8x8xf32>
    %24 = arith.mulf %20, %15 : vector<8x8xf32>
    %25 = arith.addf %23, %24 : vector<8x8xf32>
    %cst_21 = arith.constant 0.353553385 : f32
    %26 = vector.broadcast %cst_21 : f32 to vector<8x8xf32>
    %27 = arith.mulf %25, %26 : vector<8x8xf32>
    %28 = arith.mulf %17, %14 : vector<8x8xf32>
    %29 = arith.mulf %22, %15 : vector<8x8xf32>
    %30 = arith.addf %28, %29 : vector<8x8xf32>
    %31 = arith.truncf %27 : vector<8x8xf32> to vector<8x8xbf16>
    %c0_22 = arith.constant 0 : index
    %c0_23 = arith.constant 0 : index
    %c0_24 = arith.constant 0 : index
    %c0_25 = arith.constant 0 : index
    %32 = vector.load %arg10[%c0_22, %c0_23, %c0_24, %c0_25] : memref<1x1x8x8xbf16, #tpu.memory_space<vmem>>, vector<1x1x8x8xbf16>
    %33 = vector.shape_cast %32 : vector<1x1x8x8xbf16> to vector<8x8xbf16>
    %34 = vector.shape_cast %31 : vector<8x8xbf16> to vector<1x1x8x8xbf16>
    tpu.vector_store %arg10[%c0_22, %c0_23, %c0_24, %c0_25], %34 {strides = array<i32>} : memref<1x1x8x8xbf16, #tpu.memory_space<vmem>>, vector<1x1x8x8xbf16>,
    %35 = arith.truncf %30 : vector<8x8xf32> to vector<8x8xbf16>
    %c0_26 = arith.constant 0 : index
    %c0_27 = arith.constant 0 : index
    %c0_28 = arith.constant 0 : index
    %c0_29 = arith.constant 0 : index
    %36 = vector.load %arg11[%c0_26, %c0_27, %c0_28, %c0_29] : memref<1x1x8x8xbf16, #tpu.memory_space<vmem>>, vector<1x1x8x8xbf16>
    %37 = vector.shape_cast %36 : vector<1x1x8x8xbf16> to vector<8x8xbf16>
    %38 = vector.shape_cast %35 : vector<8x8xbf16> to vector<1x1x8x8xbf16>
    tpu.vector_store %arg11[%c0_26, %c0_27, %c0_28, %c0_29], %38 {strides = array<i32>} : memref<1x1x8x8xbf16, #tpu.memory_space<vmem>>, vector<1x1x8x8xbf16>,
    %39 = arith.truncf %18 : vector<8x8xf32> to vector<8x8xbf16>
    %c0_30 = arith.constant 0 : index
    %c0_31 = arith.constant 0 : index
    %c0_32 = arith.constant 0 : index
    %c0_33 = arith.constant 0 : index
    %40 = vector.load %arg12[%c0_30, %c0_31, %c0_32, %c0_33] : memref<1x1x8x8xbf16, #tpu.memory_space<vmem>>, vector<1x1x8x8xbf16>
    %41 = vector.shape_cast %40 : vector<1x1x8x8xbf16> to vector<8x8xbf16>
    %42 = vector.shape_cast %39 : vector<8x8xbf16> to vector<1x1x8x8xbf16>
    tpu.vector_store %arg12[%c0_30, %c0_31, %c0_32, %c0_33], %42 {strides = array<i32>} : memref<1x1x8x8xbf16, #tpu.memory_space<vmem>>, vector<1x1x8x8xbf16>,
    return
  }
  func.func @transform_0(%arg0: i32, %arg1: i32, %arg2: i32) -> (i32, i32, i32) {
    %c0_i32 = arith.constant 0 : i32
    %c0_i32_0 = arith.constant 0 : i32
    return %arg0, %arg1, %c0_i32 : i32, i32, i32
  }
  func.func @transform_1(%arg0: i32, %arg1: i32, %arg2: i32) -> (i32, i32, i32) {
    %c0_i32 = arith.constant 0 : i32
    %c0_i32_0 = arith.constant 0 : i32
    %c0_i32_1 = arith.constant 0 : i32
    return %arg2, %c0_i32, %c0_i32_0 : i32, i32, i32
  }
  func.func @transform_2(%arg0: i32, %arg1: i32, %arg2: i32) -> (i32, i32, i32) {
    %c0_i32 = arith.constant 0 : i32
    %c0_i32_0 = arith.constant 0 : i32
    %c0_i32_1 = arith.constant 0 : i32
    return %arg2, %c0_i32, %c0_i32_0 : i32, i32, i32
  }
  func.func @transform_3(%arg0: i32, %arg1: i32, %arg2: i32) -> (i32, i32, i32) {
    %c0_i32 = arith.constant 0 : i32
    %c0_i32_0 = arith.constant 0 : i32
    %c0_i32_1 = arith.constant 0 : i32
    return %arg2, %c0_i32, %c0_i32_0 : i32, i32, i32
  }
  func.func @transform_4(%arg0: i32, %arg1: i32, %arg2: i32) -> (i32, i32) {
    %c0_i32 = arith.constant 0 : i32
    %c0_i32_0 = arith.constant 0 : i32
    return %arg1, %c0_i32 : i32, i32
  }
  func.func @transform_5(%arg0: i32, %arg1: i32, %arg2: i32) -> (i32, i32) {
    %c0_i32 = arith.constant 0 : i32
    %c0_i32_0 = arith.constant 0 : i32
    return %arg1, %c0_i32 : i32, i32
  }
  func.func @transform_6(%arg0: i32, %arg1: i32, %arg2: i32) -> (i32, i32) {
    %c0_i32 = arith.constant 0 : i32
    %c0_i32_0 = arith.constant 0 : i32
    %c0_i32_1 = arith.constant 0 : i32
    return %c0_i32, %c0_i32_0 : i32, i32
  }
  func.func @transform_7(%arg0: i32, %arg1: i32, %arg2: i32) -> (i32, i32, i32, i32) {
    %c0_i32 = arith.constant 0 : i32
    %c0_i32_0 = arith.constant 0 : i32
    return %arg0, %arg2, %arg1, %c0_i32 : i32, i32, i32, i32
  }
  func.func @transform_8(%arg0: i32, %arg1: i32, %arg2: i32) -> (i32, i32, i32, i32) {
    %c0_i32 = arith.constant 0 : i32
    %c0_i32_0 = arith.constant 0 : i32
    return %arg0, %arg2, %arg1, %c0_i32 : i32, i32, i32, i32
  }
  func.func @transform_9(%arg0: i32, %arg1: i32, %arg2: i32) -> (i32, i32, i32, i32) {
    %c0_i32 = arith.constant 0 : i32
    %c0_i32_0 = arith.constant 0 : i32
    return %arg0, %arg2, %arg1, %c0_i32 : i32, i32, i32, i32
  }
}

</mosaic_0001>

<bundles_post_ra>
// kernel: tpu_custom_call.1
= control target key start
LH: loop header
LB: loop body
LE: loop exit
PB: predicated region body
PF: predicated region fallthrough
CT: control target
= control target key end

     0   :  { %s1335_s30 = smov 0   ;;  %s1337_s10 = smov 0   ;;  %s1473_s0 = inlined_call_operand.vmem [shape: f32[2,16,32], index: 0, kind: input, shape index: {}]   ;;  %s1474_s1 = inlined_call_operand.vmem [shape: f32[4,32,8], index: 1, kind: input, shape index: {}]   ;;  %s1475_s2 = inlined_call_operand.vmem [shape: f32[4,32,8], index: 2, kind: input, shape index: {}]   ;;  %s1476_s3 = inlined_call_operand.vmem [shape: f32[4,32,8], index: 3, kind: input, shape index: {}]   ;;  %s1477_s4 = inlined_call_operand.vmem [shape: f32[16,8], index: 4, kind: input, shape index: {}]   ;;  %s1478_s5 = inlined_call_operand.vmem [shape: f32[16,8], index: 5, kind: input, shape index: {}]   ;;  %s1479_s6 = inlined_call_operand.vmem [shape: f32[8,8], index: 6, kind: input, shape index: {}]   ;;  %s1480_s7 = inlined_call_operand.vmem [shape: bf16[2,4,16,8], index: 7, kind: output, shape index: {0}]   ;;  %s1481_s8 = inlined_call_operand.vmem [shape: bf16[2,4,16,8], index: 8, kind: output, shape index: {1}]   ;;  %s1482_s9 = inlined_call_operand.vmem [shape: bf16[2,4,16,8], index: 9, kind: output, shape index: {2}]  }
   0x1   :  { %s1339_s11 = smov 0   ;;  %s1341_s12 = smov 0  }
   0x2   :  { %s1343_s13 = smov 0   ;;  %s1345_s14 = smov 0  }
   0x3   :  { %s1347_s15 = smov 0  }
   0x4 LB: > { %s32_s16 = sadd.s32 1, %s1269_s12  ;;  %s35_s17 = sadd.s32 1, %s1273_s13  ;;  %s1281_s15 = sphi %s1347_s15, %s20_s15   ;;  %s1277_s14 = sphi %s1345_s14, %s1488_s14   ;;  %s1273_s13 = sphi %s1343_s13, %s1487_s13   ;;  %s1269_s12 = sphi %s1341_s12, %s1486_s12   ;;  %s1265_s11 = sphi %s1339_s11, %s1485_s11   ;;  %s1261_s10 = sphi %s1337_s10, %s1484_s10   ;;  %s1257_s30 = sphi %s1335_s30, %s1483_s30  }
   0x5   : > { %p33_p0 = scmp.ge.s32.totalorder %s32_s16, 4  ;;  %p1090_p1 = scmp.ge.s32.totalorder %s1281_s15, 1 }
   0x6   : > { %p376_p2 = scmp.lt.s32.totalorder %s1281_s15, 17  ;;  %s39_s18 = sadd.s32 1, %s1277_s14 }
   0x7   : > { %s1490_s16 = smov (%p33_p0, %s32_s16), 0  ;;  %s1492_s17 = smov (!%p33_p0, %s35_s17), %s1273_s13 }
   0x8   : > { %p377_p3 = pnand %p1090_p1, %p376_p2  ;;  %p37_p4 = scmp.ge.s32.totalorder %s1492_s17, 2 }
   0x9   : > { %p477_p6 = scmp.lt.s32.totalorder (!%p377_p3), %s1257_s30, 3  ;;  %p469_p7 = scmp.lt.s32.totalorder (!%p377_p3), %s1265_s11, 1 }
   0xa   : > { %s1494_s17 = smov (%p37_p4, %s1492_s17), 0  ;;  %s1496_s18 = smov (!%p37_p4, %s39_s18), %s1277_s14 }
   0xb   : > { %p41_p5 = scmp.ge.s32.totalorder %s1496_s18, 2  ;;  %380 = sbr.rel (%p377_p3) target bundleno = 426 (0x1aa), region = 48 }
   0xc   : > { %p471_p8 = scmp.lt.s32.totalorder (!%p377_p3), %s1261_s10, 1 }
   0xd   : > { %s1498_s18 = smov (%p41_p5, %s1496_s18), 0 }
  0x10   : > { %v1283_v0 = vmov 0.0   ;;  %s1500_s30 = smov (!%p477_p6, %s1257_s30), 3  ;;  %vm1284_vm0 = vmmov 0   ;;  %s1502_s11 = smov (!%p469_p7, %s1265_s11), 1  ;;  %v557_v12 = vld [vmem:[%s1479_s6] sm:$0xff]  ;;  %vm561_vm1 = vcmask 261120  }
  0x11   : > { %1133 = vmatprep.subr.bf16.mxu0 %v1283_v0  ;;  %1141 = vmatprep.subr.bf16.mxu1 %v1283_v0  ;;  %s1117_s19 = sshll.u32 %s1500_s30, 5  ;;  %s1091_s29 = sshll.u32 %s1502_s11, 1  ;;  %v558_v17 = vpack.c.bf16 %v557_v12, %v557_v12  ;;  %vm690_vm2 = vcmask 1043456   ;;  %vm686_vm3 = vcmask 64512   ;;  %vm786_vm4 = vcmask 60416  }
  0x12   : > { %1137 = vmatprep.mubr.msk.bf16.mxu0 %vm1284_vm0, %v1283_v0  ;;  %1145 = vmatprep.mubr.msk.bf16.mxu1 %vm1284_vm0, %v1283_v0  ;;  %s481_s22 = scalar_lea.vmem %s1474_s1, %s1117_s19  ;;  %s1397_s25 = scalar_lea.vmem %s1476_s3, %s1117_s19 }
  0x13   : > { %v541_v1 = vld [vmem:[%s481_s22 + $0x10] sm:$0xff]  ;;  %v542_v2 = vld [vmem:[%s481_s22 + $0x18] sm:$0xff]  ;;  %s486_s28 = scalar_lea.vmem %s1475_s2, %s1117_s19  ;;  %v539_v3 = vld [vmem:[%s481_s22] sm:$0xff]  ;;  %s1504_s10 = smov (!%p471_p8, %s1261_s10), 1  ;;  %v692_v22 = vsel %vm690_vm2, %v558_v17, 0 }
  0x14   : > { %v544_v4 = vpack.c.bf16 %v542_v2, %v541_v1  ;;  %v547_v5 = vld [vmem:[%s486_s28 + $0x10] sm:$0xff]  ;;  %v548_v6 = vld [vmem:[%s486_s28 + $0x18] sm:$0xff]  ;;  %v540_v7 = vld [vmem:[%s481_s22 + $0x8] sm:$0xff]  ;;  %s474_s20 = sadd.s32 %s1091_s29, %s1504_s10  ;;  %s1099_s19 = sshll.u32 %s1504_s10, 3 }
  0x15   : > { %v550_v8 = vpack.c.bf16 %v548_v6, %v547_v5  ;;  %v545_v9 = vld [vmem:[%s486_s28] sm:$0xff]  ;;  %v546_v10 = vld [vmem:[%s486_s28 + $0x8] sm:$0xff]  ;;  %v543_v11 = vpack.c.bf16 %v540_v7, %v539_v3  ;;  %s1092_s22 = sshll.u32 %s474_s20, 3  ;;  %v553_v14 = vld [vmem:[%s1397_s25 + $0x10] sm:$0xff]  ;;  %s1102_s28 = sshll.u32 %s1502_s11, 3 }
  0x16   : > { %1134 = vmatpush3.bf16.msra.mxu0 %v544_v4  ;;  %v549_v13 = vpack.c.bf16 %v546_v10, %v545_v9  ;;  %v554_v15 = vld [vmem:[%s1397_s25 + $0x18] sm:$0xff]  ;;  %s476_s26 = scalar_lea.vmem %s1473_s0, %s1092_s22  ;;  %v551_v20 = vld [vmem:[%s1397_s25] sm:$0xff]  ;;  %v552_v21 = vld [vmem:[%s1397_s25 + $0x8] sm:$0xff]  ;;  %s1101_s25 = sshll.u32 %s1500_s30, 1 }
  0x17   : > { %1142 = vmatpush3.bf16.msra.mxu1 %v550_v8  ;;  %1135 = vmatprep.subr.bf16.mxu0 %v1283_v0  ;;  %v537_v16 = vld [vmem:[%s476_s26] sm:$0xff]  ;;  %v556_v19 = vpack.c.bf16 %v554_v15, %v553_v14  ;;  %v555_v23 = vpack.c.bf16 %v552_v21, %v551_v20  ;;  %s507_s27 = sadd.s32 %s1101_s25, %s1504_s10  ;;  %s495_s24 = scalar_lea.vmem %s1477_s4, %s1099_s19 }
  0x18   : > { %1143 = vmatprep.subr.bf16.mxu1 %v1283_v0  ;;  %v538_v18 = vpack.c.bf16 %v537_v16, %v537_v16  ;;  %s509_s29 = sadd.s32 %s1102_s28, %s507_s27  ;;  %s499_s27 = scalar_lea.vmem %s1478_s5, %s1099_s19  ;;  %v559_v39 = vld [vmem:[%s495_s24] sm:$0xff] }
  0x19   : > { %s1428_s20 = sshll.u32 %s509_s29, 2  ;;  %v560_v40 = vld [vmem:[%s499_s27] sm:$0xff] }
  0x1a   : > { %1136 = vmatpush3.bf16.msra.mxu0 %v543_v11  ;;  %s535_s21 = scalar_lea.vmem %s1482_s9, %s1428_s20  ;;  %s523_s29 = scalar_lea.vmem %s1481_s8, %s1428_s20 }
  0x1b   : > { %1144 = vmatpush3.bf16.msra.mxu1 %v549_v13  ;;  %1149 = vmatprep.subr.bf16.mxu0 %v1283_v0 }
  0x1c   : > { %1157 = vmatprep.subr.bf16.mxu1 %v1283_v0 }
  0x1d   : > { %1138 = vmatmul.mubr.msk.bf16.vlgmr.msra.gmra.mxu0 %vm561_vm1, %v538_v18 }
  0x1e   : > { %1146 = vmatmul.mubr.msk.bf16.vlgmr.msra.gmra.mxu1 %vm561_vm1, %v538_v18  ;;  %1150 = vmatpush3.bf16.msra.mxu0 %v556_v19 }
  0x1f   : > { %1151 = vmatprep.subr.bf16.mxu0 %v1283_v0  ;;  %1153 = vmatprep.mubr.msk.bf16.mxu0 %vm1284_vm0, %v1283_v0 }
  0x20   : > { %1158 = vmatpush3.bf16.msra.mxu1 %v692_v22  ;;  %1159 = vmatprep.mubr.msk.bf16.mxu1 %vm1284_vm0, %v1283_v0 }
  0x22   : > { %1152 = vmatpush3.bf16.msra.mxu0 %v555_v23 }
  0x23   : > { %1163 = vmatprep.subr.bf16.mxu0 %v1283_v0 }
  0x25   : > { %1154 = vmatmul.mubr.msk.bf16.vlgmr.msra.gmra.mxu0 %vm561_vm1, %v538_v18 }
  0x26   : > { %1164 = vmatpush3.bf16.msra.mxu0 %v692_v22  ;;  %1165 = vmatprep.mubr.msk.bf16.mxu0 %vm1284_vm0, %v1283_v0 }
  0xdd   : > { %v599_v24 = vpop.f32.mrf.mxu0 }
  0xde   : > { %v685_v25 = vpack.c.bf16 %v599_v24, %v599_v24  ;;  %v639_v26 = vpop.f32.mrf.mxu1  ;;  %v778_v42 = vmul.f32 %v599_v24, %v559_v39 }
  0xdf   : > { %v734_v27 = vpack.c.bf16 %v639_v26, %v639_v26  ;;  %v1139_v28 = vpop.f32.mrf.mxu0  ;;  %v782_v45 = vmul.f32 %v639_v26, %v559_v39 }
  0xe0   : > { %v1147_v29 = vpop.f32.mrf.mxu1  ;;  %1160 = vmatmul.mubr.msk.bf16.vlgmr.msra.gmra.mxu1 %vm686_vm3, %v685_v25 }
  0xe1   : > { %1166 = vmatmul.mubr.msk.bf16.vlgmr.msra.gmra.mxu0 %vm686_vm3, %v734_v27  ;;  %v602_v30 = vpop.f32.mrf.mxu0 }
  0xe2   : > { %v642_v31 = vpop.f32.mrf.mxu1 }
  0xe3   : > { %v1140_v32 = vpop.f32.mrf.mxu0 }
  0xe4   : > { %v1148_v33 = vpop.f32.mrf.mxu1 }
  0xe5   : > { %v679_v34 = vpop.f32.mrf.mxu0 }
  0xe6   : > { %v790_v35 = vpack.c.bf16 %v679_v34, %v679_v34 }
  0xe7   : > { %v1155_v36 = vpop.f32.mrf.mxu0 }
  0xe8   : > { %791 = vst.msk [vmem:[%s535_s21] sm:$0xf] %vm786_vm4, %v790_v35  ;;  %s511_s21 = scalar_lea.vmem %s1480_s7, %s1428_s20 }
  0xe9   : > { %v682_v37 = vpop.f32.mrf.mxu0 }
  0xeb   : > { %v1156_v38 = vpop.f32.mrf.mxu0 }
 0x1a0   : > { %v728_v41 = vpop.f32.mrf.mxu1 }
 0x1a1   : > { %v779_v43 = vmul.f32 %v728_v41, %v560_v40  ;;  %v772_v44 = vpop.f32.mrf.mxu0 }
 0x1a2   : > { %v783_v46 = vmul.f32 %v772_v44, %v560_v40  ;;  %v1161_v47 = vpop.f32.mrf.mxu1 }
 0x1a3   : > { %v780_v48 = vadd.f32 %v779_v43, %v778_v42  ;;  %v1167_v49 = vpop.f32.mrf.mxu0 }
 0x1a4   : > { %v784_v50 = vadd.f32 %v783_v46, %v782_v45  ;;  %v731_v51 = vpop.f32.mrf.mxu1 }
 0x1a5   : > { %v781_v52 = vmul.f32 0.35355338, %v780_v48  ;;  %v775_v53 = vpop.f32.mrf.mxu0 }
 0x1a6   : > { %v788_v54 = vpack.c.bf16 %v784_v50, %v784_v50  ;;  %v1162_v55 = vpop.f32.mrf.mxu1 }
 0x1a7   : > { %v785_v56 = vpack.c.bf16 %v781_v52, %v781_v52  ;;  %v1168_v57 = vpop.f32.mrf.mxu0 }
 0x1a8   : > { %789 = vst.msk [vmem:[%s523_s29] sm:$0xf] %vm786_vm4, %v788_v54 }
 0x1a9   : > { %787 = vst.msk [vmem:[%s511_s21] sm:$0xf] %vm786_vm4, %v785_v56 }
 0x1aa PF: > { %s20_s15 = sadd.s32 1, %s1281_s15   ;;  %s1483_s30 = smov %s1269_s12 }
 0x1ab   : > { %p17_p9 = scmp.ge.s32.totalorder %s20_s15, 18   ;;  %s1484_s10 = smov %s1273_s13 }
 0x1ac   : > { %s1485_s11 = smov %s1277_s14  ;;  %s1486_s12 = smov %s1490_s16 }
 0x1ad   : > { %s1487_s13 = smov %s1494_s17  ;;  %s1488_s14 = smov %s1498_s18 }
 0x1ae   :  { %19 = sbr.rel (!%p17_p9) target bundleno = 4 (0x4), region = 117 }

</bundles_post_ra>
